<compile_context>
chip_gen: v7x
topology: tpu7x:2x2x1
jax: 0.10.0
libtpu: 0.0.40
codegen_flags: <defaults>
</compile_context>

<pallas_src>
import math

import numpy as np
import jax
import jax.numpy as jnp
from jax import lax
from jax.experimental import pallas as pl
from jax.experimental.pallas import tpu as pltpu


def _round_up(x, m):
    return ((x + m - 1) // m) * m


def _pick_tile(dim, granule, max_tile):
    """Pad `dim` to a multiple of `granule`; pick the largest tile that is a
    multiple of `granule`, divides the padded dim exactly, and is <= max_tile.
    Keeps padding minimal (< granule) while maximizing DMA / block size."""
    padded = _round_up(dim, granule)
    tile = granule
    t = granule
    while t <= min(max_tile, padded):
        if padded % t == 0:
            tile = t
        t += granule
    return tile, padded


def _noisy_linear_kernel(x_ref, mu_w_ref, sigma_w_ref, f_out_ref, f_in_ref,
                         b_ref, o_ref, acc_ref):
    k = pl.program_id(2)

    @pl.when(k == 0)
    def _():
        acc_ref[...] = jnp.zeros_like(acc_ref)

    # Rebuild the rank-1 noise tile on the VPU (free filler under the MXU) and
    # form the effective weight tile in f32.  Upcasting right after load keeps
    # the combine legal even with bf16 weight storage on v5e (no bf16 VALU).
    f_out = f_out_ref[...].astype(jnp.float32)                          # (tn, 1)
    f_in = f_in_ref[...].astype(jnp.float32)                            # (1, tk)
    w_eff = (mu_w_ref[...].astype(jnp.float32)
             + sigma_w_ref[...].astype(jnp.float32) * (f_out * f_in))   # (tn, tk)

    # x (tm, tk) contracted with w_eff (tn, tk) along K of both: no transpose,
    # MXU fed straight from the natural (out, in) weight layout.
    acc_ref[...] += lax.dot_general(
        x_ref[...].astype(jnp.float32), w_eff,
        dimension_numbers=(((1,), (1,)), ((), ())),
        preferred_element_type=jnp.float32)

    @pl.when(k == pl.num_programs(2) - 1)
    def _():
        o_ref[...] = (acc_ref[...] + b_ref[...].astype(jnp.float32)
                      ).astype(o_ref.dtype)


def noisy_linear(x, mu_w, sigma_w, f_out, f_in, mu_b, sigma_b, eps_b,
                 *, tm=None, tn=None, tk=None, weight_dtype=None):
    """NoisyNet linear forward.  x: (B, in_dim) f32 -> (B, out_dim) f32.

    mu_w/sigma_w: (out_dim, in_dim); f_out: (out_dim,); f_in: (in_dim,);
    mu_b/sigma_b/eps_b: (out_dim,).  eps_w = outer(f_out, f_in) is rebuilt
    inside the kernel and never stored in HBM."""
    B, in_dim = x.shape
    out_dim = mu_w.shape[0]

    # Pre-combine the bias once in plain JAX (one tiny (1, out) DMA).
    b_eff = (mu_b + sigma_b * eps_b).reshape(1, out_dim).astype(jnp.float32)

    # Adaptive, lane-dense tiling: minimal padding, biggest clean tiles.
    tm_auto, B_pad = _pick_tile(B, 8, 128)
    tn_auto, out_pad = _pick_tile(out_dim, 128, 256)
    tk_auto, in_pad = _pick_tile(in_dim, 128, 512)
    tm = tm_auto if tm is None else tm
    tn = tn_auto if tn is None else tn
    tk = tk_auto if tk is None else tk

    wdt = mu_w.dtype if weight_dtype is None else weight_dtype

    def pad2(a, rows, cols, dtype=None):
        if dtype is not None:
            a = a.astype(dtype)
        return jnp.pad(a, ((0, rows - a.shape[0]), (0, cols - a.shape[1])))

    x_p = pad2(x, B_pad, in_pad)
    mu_w_p = pad2(mu_w, out_pad, in_pad, wdt)
    sigma_w_p = pad2(sigma_w, out_pad, in_pad, wdt)
    f_out_p = pad2(f_out.reshape(out_dim, 1), out_pad, 1, wdt)
    f_in_p = pad2(f_in.reshape(1, in_dim), 1, in_pad, wdt)
    b_p = pad2(b_eff, 1, out_pad)

    grid = (B_pad // tm, out_pad // tn, in_pad // tk)

    w_itemsize = np.dtype(wdt).itemsize
    flops = 2 * B_pad * in_pad * out_pad
    bytes_accessed = (4 * (B_pad * in_pad + B_pad * out_pad + out_pad)
                      + w_itemsize * (2 * out_pad * in_pad + out_pad + in_pad))

    out_p = pl.pallas_call(
        _noisy_linear_kernel,
        out_shape=jax.ShapeDtypeStruct((B_pad, out_pad), jnp.float32),
        grid=grid,
        in_specs=[
            pl.BlockSpec((tm, tk), lambda i, j, k: (i, k)),   # x
            pl.BlockSpec((tn, tk), lambda i, j, k: (j, k)),   # mu_w
            pl.BlockSpec((tn, tk), lambda i, j, k: (j, k)),   # sigma_w
            pl.BlockSpec((tn, 1), lambda i, j, k: (j, 0)),    # f_out (column)
            pl.BlockSpec((1, tk), lambda i, j, k: (0, k)),    # f_in  (row)
            pl.BlockSpec((1, tn), lambda i, j, k: (0, j)),    # precombined bias
        ],
        out_specs=pl.BlockSpec((tm, tn), lambda i, j, k: (i, j)),
        scratch_shapes=[pltpu.VMEM((tm, tn), jnp.float32)],
        compiler_params=pltpu.CompilerParams(
            dimension_semantics=("parallel", "parallel", "arbitrary")),
        cost_estimate=pl.CostEstimate(
            flops=flops, transcendentals=0, bytes_accessed=int(bytes_accessed)),
    )(x_p, mu_w_p, sigma_w_p, f_out_p, f_in_p, b_p)

    return out_p[:B, :out_dim]


def init_noisy_layer_params(key, in_dim, out_dim, sigma_init=0.5):
    """Re-implementation of NoisyLayer.__init__ + update_noise (deterministic).

    Returns the factorized noise vectors (f_out, f_in) instead of the
    materialized eps_w = outer(f_out, f_in)."""
    k_mu_w, k_mu_b, k_fo, k_fi, k_fb = jax.random.split(key, 5)

    bound = math.sqrt(1.0 / in_dim)
    mu_w = jax.random.uniform(k_mu_w, (out_dim, in_dim), jnp.float32,
                              minval=-bound, maxval=bound)
    mu_b = jax.random.uniform(k_mu_b, (out_dim,), jnp.float32,
                              minval=-bound, maxval=bound)
    sigma_w = jnp.full((out_dim, in_dim), sigma_init / math.sqrt(out_dim),
                       dtype=jnp.float32)
    sigma_b = jnp.full((out_dim,), sigma_init / math.sqrt(out_dim),
                       dtype=jnp.float32)

    def factorize_noise(k, size):
        v = 0.001 * jax.random.normal(k, (size,), jnp.float32)
        return jnp.sign(v) * jnp.sqrt(jnp.abs(v))

    f_out = factorize_noise(k_fo, out_dim)
    f_in = factorize_noise(k_fi, in_dim)
    eps_b = factorize_noise(k_fb, out_dim)

    return mu_w, mu_b, sigma_w, sigma_b, f_out, f_in, eps_b


if __name__ == "__main__":
    key = jax.random.PRNGKey(0)
    k_p1, k_x1, k_p2, k_x2 = jax.random.split(key, 4)

    # --- small shape consistent with the torch module ---
    B, in_dim, out_dim = 8, 32, 64
    mu_w, mu_b, sigma_w, sigma_b, f_out, f_in, eps_b = init_noisy_layer_params(
        k_p1, in_dim, out_dim)
    x = jax.random.normal(k_x1, (B, in_dim), jnp.float32)

    out = noisy_linear(x, mu_w, sigma_w, f_out, f_in, mu_b, sigma_b, eps_b)
    out = jax.block_until_ready(out)

    eps_w = jnp.outer(f_out, f_in)   # only for the reference check
    ref = x @ (mu_w + sigma_w * eps_w).T + (mu_b + sigma_b * eps_b)
    assert out.shape == (B, out_dim)
    assert jnp.allclose(out, ref, atol=1e-5, rtol=1e-5)

    # --- larger shape exercising multi-tile N and K accumulation ---
    B2, in2, out2 = 16, 640, 384
    mu_w2, mu_b2, sigma_w2, sigma_b2, f_out2, f_in2, eps_b2 = \
        init_noisy_layer_params(k_p2, in2, out2)
    x2 = jax.random.normal(k_x2, (B2, in2), jnp.float32)

    out2_ = jax.block_until_ready(
        noisy_linear(x2, mu_w2, sigma_w2, f_out2, f_in2, mu_b2, sigma_b2, eps_b2))
    ref2 = (x2 @ (mu_w2 + sigma_w2 * jnp.outer(f_out2, f_in2)).T
            + (mu_b2 + sigma_b2 * eps_b2))
    assert out2_.shape == (B2, out2)
    assert jnp.allclose(out2_, ref2, atol=1e-4, rtol=1e-4)

    print("KERNEL_OK")
</pallas_src>

<mosaic_0001>
module attributes {stable_mosaic.version = 11 : i64} {
  func.func @_noisy_linear_kernel(%arg0: i32, %arg1: i32, %arg2: i32, %arg3: memref<8x128xf32, #tpu.memory_space<vmem>>, %arg4: memref<128x128xf32, #tpu.memory_space<vmem>>, %arg5: memref<128x128xf32, #tpu.memory_space<vmem>>, %arg6: memref<128x1xf32, #tpu.memory_space<vmem>>, %arg7: memref<1x128xf32, #tpu.memory_space<vmem>>, %arg8: memref<1x128xf32, #tpu.memory_space<vmem>>, %arg9: memref<8x128xf32, #tpu.memory_space<vmem>>, %arg10: memref<8x128xf32, #tpu.memory_space<vmem>>) attributes {dimension_semantics = [#tpu.dimension_semantics<parallel>, #tpu.dimension_semantics<parallel>, #tpu.dimension_semantics<arbitrary>], iteration_bounds = array<i64: 1, 1, 1>, scalar_prefetch = 0 : i64, scratch_operands = 1 : i64, tpu.core_type = #tpu.core_type<tc>, window_params = [{transform_indices = @transform_0, window_bounds = array<i64: 8, 128>}, {transform_indices = @transform_1, window_bounds = array<i64: 128, 128>}, {transform_indices = @transform_2, window_bounds = array<i64: 128, 128>}, {transform_indices = @transform_3, window_bounds = array<i64: 128, 1>}, {transform_indices = @transform_4, window_bounds = array<i64: 1, 128>}, {transform_indices = @transform_5, window_bounds = array<i64: 1, 128>}, {transform_indices = @transform_6, window_bounds = array<i64: 8, 128>}]} {
    %c0_i32 = arith.constant 0 : i32
    %0 = arith.cmpi eq, %arg2, %c0_i32 : i32
    %1 = arith.extui %0 : i1 to i32
    %c0_i32_0 = arith.constant 0 : i32
    %2 = arith.cmpi ne, %1, %c0_i32_0 : i32
    scf.if %2 {
      %cst_16 = arith.constant 0.000000e+00 : f32
      %20 = vector.broadcast %cst_16 : f32 to vector<8x128xf32>
      %c0_17 = arith.constant 0 : index
      %c0_18 = arith.constant 0 : index
      %21 = vector.load %arg10[%c0_17, %c0_18] : memref<8x128xf32, #tpu.memory_space<vmem>>, vector<8x128xf32>
      tpu.vector_store %arg10[%c0_17, %c0_18], %20 {strides = array<i32>} : memref<8x128xf32, #tpu.memory_space<vmem>>, vector<8x128xf32>,
    } else {
    }
    %c0 = arith.constant 0 : index
    %c0_1 = arith.constant 0 : index
    %3 = vector.load %arg6[%c0, %c0_1] : memref<128x1xf32, #tpu.memory_space<vmem>>, vector<128x1xf32>
    %c0_2 = arith.constant 0 : index
    %c0_3 = arith.constant 0 : index
    %4 = vector.load %arg7[%c0_2, %c0_3] : memref<1x128xf32, #tpu.memory_space<vmem>>, vector<1x128xf32>
    %c0_4 = arith.constant 0 : index
    %c0_5 = arith.constant 0 : index
    %5 = vector.load %arg4[%c0_4, %c0_5] : memref<128x128xf32, #tpu.memory_space<vmem>>, vector<128x128xf32>
    %c0_6 = arith.constant 0 : index
    %c0_7 = arith.constant 0 : index
    %6 = vector.load %arg5[%c0_6, %c0_7] : memref<128x128xf32, #tpu.memory_space<vmem>>, vector<128x128xf32>
    %7 = vector.broadcast %3 : vector<128x1xf32> to vector<128x128xf32>
    %8 = vector.broadcast %4 : vector<1x128xf32> to vector<128x128xf32>
    %9 = arith.mulf %7, %8 : vector<128x128xf32>
    %10 = arith.mulf %6, %9 : vector<128x128xf32>
    %11 = arith.addf %5, %10 : vector<128x128xf32>
    %c0_8 = arith.constant 0 : index
    %c0_9 = arith.constant 0 : index
    %12 = vector.load %arg10[%c0_8, %c0_9] : memref<8x128xf32, #tpu.memory_space<vmem>>, vector<8x128xf32>
    %c0_10 = arith.constant 0 : index
    %c0_11 = arith.constant 0 : index
    %13 = vector.load %arg3[%c0_10, %c0_11] : memref<8x128xf32, #tpu.memory_space<vmem>>, vector<8x128xf32>
    %cst = arith.constant dense<0.000000e+00> : vector<8x128xf32>
    %14 = tpu.matmul %13, %11, %cst {dimension_numbers = #tpu.dot_dimension_numbers<[1], [1], [0], [0], [0, 0, 1, 0], [], []>} : vector<8x128xf32>, vector<128x128xf32>, vector<8x128xf32> -> vector<8x128xf32>
    %15 = arith.addf %12, %14 : vector<8x128xf32>
    %c0_12 = arith.constant 0 : index
    %c0_13 = arith.constant 0 : index
    %16 = vector.load %arg10[%c0_12, %c0_13] : memref<8x128xf32, #tpu.memory_space<vmem>>, vector<8x128xf32>
    tpu.vector_store %arg10[%c0_12, %c0_13], %15 {strides = array<i32>} : memref<8x128xf32, #tpu.memory_space<vmem>>, vector<8x128xf32>,
    %c0_i32_14 = arith.constant 0 : i32
    %17 = arith.cmpi eq, %arg2, %c0_i32_14 : i32
    %18 = arith.extui %17 : i1 to i32
    %c0_i32_15 = arith.constant 0 : i32
    %19 = arith.cmpi ne, %18, %c0_i32_15 : i32
    scf.if %19 {
      %c0_16 = arith.constant 0 : index
      %c0_17 = arith.constant 0 : index
      %20 = vector.load %arg10[%c0_16, %c0_17] : memref<8x128xf32, #tpu.memory_space<vmem>>, vector<8x128xf32>
      %c0_18 = arith.constant 0 : index
      %c0_19 = arith.constant 0 : index
      %21 = vector.load %arg8[%c0_18, %c0_19] : memref<1x128xf32, #tpu.memory_space<vmem>>, vector<1x128xf32>
      %22 = vector.broadcast %21 : vector<1x128xf32> to vector<8x128xf32>
      %23 = arith.addf %20, %22 : vector<8x128xf32>
      %c0_20 = arith.constant 0 : index
      %c0_21 = arith.constant 0 : index
      %24 = vector.load %arg9[%c0_20, %c0_21] : memref<8x128xf32, #tpu.memory_space<vmem>>, vector<8x128xf32>
      tpu.vector_store %arg9[%c0_20, %c0_21], %23 {strides = array<i32>} : memref<8x128xf32, #tpu.memory_space<vmem>>, vector<8x128xf32>,
    } else {
    }
    return
  }
  func.func @transform_0(%arg0: i32, %arg1: i32, %arg2: i32) -> (i32, i32) {
    %c0_i32 = arith.constant 0 : i32
    return %arg0, %arg2 : i32, i32
  }
  func.func @transform_1(%arg0: i32, %arg1: i32, %arg2: i32) -> (i32, i32) {
    %c0_i32 = arith.constant 0 : i32
    return %arg1, %arg2 : i32, i32
  }
  func.func @transform_2(%arg0: i32, %arg1: i32, %arg2: i32) -> (i32, i32) {
    %c0_i32 = arith.constant 0 : i32
    return %arg1, %arg2 : i32, i32
  }
  func.func @transform_3(%arg0: i32, %arg1: i32, %arg2: i32) -> (i32, i32) {
    %c0_i32 = arith.constant 0 : i32
    %c0_i32_0 = arith.constant 0 : i32
    return %arg1, %c0_i32 : i32, i32
  }
  func.func @transform_4(%arg0: i32, %arg1: i32, %arg2: i32) -> (i32, i32) {
    %c0_i32 = arith.constant 0 : i32
    %c0_i32_0 = arith.constant 0 : i32
    return %c0_i32, %arg2 : i32, i32
  }
  func.func @transform_5(%arg0: i32, %arg1: i32, %arg2: i32) -> (i32, i32) {
    %c0_i32 = arith.constant 0 : i32
    %c0_i32_0 = arith.constant 0 : i32
    return %c0_i32, %arg1 : i32, i32
  }
  func.func @transform_6(%arg0: i32, %arg1: i32, %arg2: i32) -> (i32, i32) {
    %c0_i32 = arith.constant 0 : i32
    return %arg0, %arg1 : i32, i32
  }
}

</mosaic_0001>

<bundles_post_ra>
// kernel: tpu_custom_call.1
= control target key start
LH: loop header
LB: loop body
LE: loop exit
PB: predicated region body
PF: predicated region fallthrough
CT: control target
= control target key end

     0   :  { %11 = vsyncpa [#allocation4], 0  ;;  %s717_s0 = inlined_call_operand.hbm [shape: f32[8,128], index: 0, kind: input, shape index: {}]   ;;  %s718_s1 = inlined_call_operand.vmem [shape: f32[128,128], index: 1, kind: input, shape index: {}]   ;;  %s719_s2 = inlined_call_operand.hbm [shape: f32[128,128], index: 2, kind: input, shape index: {}]   ;;  %s720_s3 = inlined_call_operand.vmem [shape: f32[128,1], index: 3, kind: input, shape index: {}]   ;;  %s721_s4 = inlined_call_operand.vmem [shape: f32[1,128], index: 4, kind: input, shape index: {}]   ;;  %s722_s5 = inlined_call_operand.vmem [shape: f32[1,128], index: 5, kind: input, shape index: {}]   ;;  %s723_s6 = inlined_call_operand.hbm [shape: f32[8,128], index: 6, kind: output, shape index: {}]  }
   0x1   :  { %12 = vsyncpa [#allocation7], 0 }
   0x2   :  { %13 = vsyncpa [#allocation5], 0  ;;  %s502_s21 = smov [#allocation3]   ;;  %s503_s23 = smov [#allocation6]  }
   0x3   :  { %s20_s22 = sshll.u32 %s502_s21, 4  ;;  %s31_s24 = sshll.u32 %s503_s23, 4  ;;  %s21_s22 = int_to_ptr.vmem [resolvable:$true] %s20_s22  ;;  %s546_s24 = int_to_ptr.vmem [resolvable:$true] %s31_s24 }
   0x4   :  { %s430_s27 = scalar_lea.hbm %s717_s0, 128 }
   0x5   :  { %p431_p0 = scmp.ne.s32.totalorder %s717_s0, %s430_s27  ;;  %p434_p1 = scmp.lt.u32.totalorder %s430_s27, %s717_s0 }
   0x7   :  { %p436_p2 = pnand %p434_p1, %p431_p0 }
   0x9   :  { %439 = shalt.err (!%p436_p2)
}
   0xa   :  { %s440_s8 = scalar_lea.vmem %s21_s22, 128  ;;  %p445_p4 = scmp.lt.s32.totalorder %s21_s22, %s21_s22 }
   0xb   :  { %p441_p3 = scmp.ne.s32.totalorder %s21_s22, %s440_s8  ;;  %p446_p5 = scmp.lt.s32.totalorder %s440_s8, %s440_s8 }
   0xd   :  { %p447_p6 = por %p446_p5, %p445_p4 }
   0xf   :  { %p448_p7 = pnand %p447_p6, %p441_p3 }
  0x11   :  { %451 = shalt.err (!%p448_p7)
}
  0x12   :  { %23 = dma.hbm_to_vmem [thread:$0]  %s717_s0, 128, %s21_s22, [#allocation4]  }
  0x13   :  { %s452_s13 = scalar_lea.hbm %s719_s2, 2048 }
  0x14   :  { %p453_p8 = scmp.ne.s32.totalorder %s719_s2, %s452_s13  ;;  %p456_p9 = scmp.lt.u32.totalorder %s452_s13, %s719_s2 }
  0x16   :  { %p458_p10 = pnand %p456_p9, %p453_p8 }
  0x18   :  { %461 = shalt.err (!%p458_p10)
}
  0x19   :  { %s462_s18 = scalar_lea.vmem %s546_s24, 2048  ;;  %p467_p12 = scmp.lt.s32.totalorder %s546_s24, %s546_s24 }
  0x1a   :  { %p463_p11 = scmp.ne.s32.totalorder %s546_s24, %s462_s18  ;;  %p468_p13 = scmp.lt.s32.totalorder %s462_s18, %s462_s18 }
  0x1c   :  { %p469_p0 = por %p468_p13, %p467_p12 }
  0x1e   :  { %p470_p1 = pnand %p469_p0, %p463_p11 }
  0x20   :  { %473 = shalt.err (!%p470_p1)
}
  0x21   :  { %s504_s0 = smov 128   ;;  %s505_s19 = smov 8  }
  0x22   :  { %37 = dma.hbm_to_vmem [thread:$0]  %s719_s2, 2048, %s546_s24, [#allocation7], %s504_s0, %s504_s0, %s505_s19  }
  0x23   :  { %496 = dma.done.wait [#allocation4], 128  }
  0x24   :  { %497 = vsyncadd [#allocation4], 4294967168 }
  0x25   :  { %498 = dma.done.wait [#allocation7], 2048  }
  0x26   :  { %499 = vsyncadd [#allocation7], 4294965248  ;;  %v506_v0 = vmov 0   ;;  %v57_v1 = vld [vmem:[%s720_s3 + $0x10] sm:$0xff]  ;;  %v55_v2 = vld [vmem:[%s720_s3] sm:$0xff]  ;;  %v507_v9 = vmov 0.0|0.0  }
  0x27   :  { %429 = vset.pattern.permute.xlu1 %v506_v0  ;;  %428 = vset.pattern.permute.xlu0 %v506_v0  ;;  %v58_v3 = vld [vmem:[%s720_s3 + $0x18] sm:$0xff]  ;;  %v56_v4 = vld [vmem:[%s720_s3 + $0x8] sm:$0xff]  ;;  %v59_v6 = vld [vmem:[%s720_s3 + $0x20] sm:$0xff]  ;;  %vm508_vm0 = vmmov 0   ;;  %v509_v18 = vmov 0.0   ;;  %s510_s9 = smov [#allocation8]  }
  0x28   :  { %116 = vperm.xlu1 %429, %v57_v1   ;;  %106 = vperm.xlu0 %428, %v55_v2   ;;  %v60_v5 = vld [vmem:[%s720_s3 + $0x28] sm:$0xff]  ;;  %v62_v7 = vld [vmem:[%s720_s3 + $0x38] sm:$0xff]  ;;  %v61_v8 = vld [vmem:[%s720_s3 + $0x30] sm:$0xff]  ;;  %s331_s10 = sshll.u32 %s510_s9, 4  ;;  %s332_s10 = int_to_ptr.vmem [resolvable:$true] %s331_s10 }
  0x29   :  { %395 = vmatprep.subr.bf16.mxu0 %v507_v9  ;;  %v64_v10 = vld [vmem:[%s720_s3 + $0x48] sm:$0xff]  ;;  %v63_v11 = vld [vmem:[%s720_s3 + $0x40] sm:$0xff]  ;;  %v66_v12 = vld [vmem:[%s720_s3 + $0x58] sm:$0xff]  ;;  %392 = vmatprep.mubr.msk.f32.mxu0 %vm508_vm0, %v509_v18  ;;  %p479_p3 = scmp.lt.s32.totalorder %s332_s10, %s332_s10 }
  0x2a   :  { %v65_v13 = vld [vmem:[%s720_s3 + $0x50] sm:$0xff]  ;;  %v68_v14 = vld [vmem:[%s720_s3 + $0x68] sm:$0xff]  ;;  %v67_v15 = vld [vmem:[%s720_s3 + $0x60] sm:$0xff] }
  0x2b   :  { %v70_v16 = vld [vmem:[%s720_s3 + $0x78] sm:$0xff]  ;;  %v69_v17 = vld [vmem:[%s720_s3 + $0x70] sm:$0xff]  ;;  %v629_v19 = vld [vmem:[%s721_s4] ss:$0 sm:$0xff] }
  0x2c   :  { %121 = vperm.xlu1 %429, %v58_v3   ;;  %111 = vperm.xlu0 %428, %v56_v4   ;;  %v88_v23 = vld [vmem:[#allocation6] sm:$0xff]  ;;  %v89_v24 = vld [vmem:[#allocation6 + $0x8] sm:$0xff]  ;;  %v72_v29 = vld [vmem:[%s718_s1] sm:$0xff] }
  0x2d   :  { %v73_v30 = vld [vmem:[%s718_s1 + $0x8] sm:$0xff]  ;;  %v90_v34 = vld [vmem:[#allocation6 + $0x10] sm:$0xff]  ;;  %v91_v35 = vld [vmem:[#allocation6 + $0x18] sm:$0xff] }
  0x2e   :  { %v74_v41 = vld [vmem:[%s718_s1 + $0x10] sm:$0xff]  ;;  %v75_v42 = vld [vmem:[%s718_s1 + $0x18] sm:$0xff]  ;;  %v92_v50 = vld [vmem:[#allocation6 + $0x20] sm:$0xff] }
  0x2f   :  { %v93_v49 = vld [vmem:[#allocation6 + $0x28] sm:$0xff]  ;;  %v77_v54 = vld [vmem:[%s718_s1 + $0x28] sm:$0xff]  ;;  %v76_v55 = vld [vmem:[%s718_s1 + $0x20] sm:$0xff] }
  0x30   :  { %131 = vperm.xlu1 %429, %v60_v5   ;;  %126 = vperm.xlu0 %428, %v59_v6   ;;  %v95_v62 = vld [vmem:[#allocation6 + $0x38] sm:$0xff]  ;;  %v94_v63 = vld [vmem:[#allocation6 + $0x30] sm:$0xff]  ;;  %v78_v4 = vld [vmem:[%s718_s1 + $0x30] sm:$0xff] }
  0x31   :  { %v79_v3 = vld [vmem:[%s718_s1 + $0x38] sm:$0xff]  ;;  %v80_v18 = vld [vmem:[%s718_s1 + $0x40] sm:$0xff] }
  0x34   :  { %141 = vperm.xlu1 %429, %v62_v7   ;;  %136 = vperm.xlu0 %428, %v61_v8  }
  0x38   :  { %151 = vperm.xlu1 %429, %v64_v10   ;;  %146 = vperm.xlu0 %428, %v63_v11  }
  0x3c   :  { %161 = vperm.xlu1 %429, %v66_v12   ;;  %156 = vperm.xlu0 %428, %v65_v13   ;;  %v97_v12 = vld [vmem:[#allocation6 + $0x48] sm:$0xff]  ;;  %v96_v13 = vld [vmem:[#allocation6 + $0x40] sm:$0xff] }
  0x40   :  { %171 = vperm.xlu1 %429, %v68_v14   ;;  %166 = vperm.xlu0 %428, %v67_v15  }
  0x44   :  { %181 = vperm.xlu1 %429, %v70_v16   ;;  %176 = vperm.xlu0 %428, %v69_v17   ;;  %v81_v17 = vld [vmem:[%s718_s1 + $0x48] sm:$0xff] }
  0xa7   :  { %v117_v20 = vpop.permute.xlu1 %116  ;;  %v107_v21 = vpop.permute.xlu0 %106 }
  0xa8   :  { %v190_v22 = vmul.f32 %v629_v19, %v107_v21  ;;  %v192_v31 = vmul.f32 %v629_v19, %v117_v20 }
  0xaa   :  { %v206_v26 = vmul.f32 %v190_v22, %v88_v23  ;;  %v208_v38 = vmul.f32 %v192_v31, %v90_v34  ;;  %v83_v31 = vld [vmem:[%s718_s1 + $0x58] sm:$0xff] }
  0xab   :  { %v112_v25 = vpop.permute.xlu0 %111  ;;  %v122_v28 = vpop.permute.xlu1 %121 }
  0xac   :  { %v191_v27 = vmul.f32 %v629_v19, %v112_v25  ;;  %v193_v32 = vmul.f32 %v629_v19, %v122_v28  ;;  %v222_v36 = vadd.f32 %v206_v26, %v72_v29  ;;  %v224_v45 = vadd.f32 %v208_v38, %v74_v41  ;;  %v99_v26 = vld [vmem:[#allocation6 + $0x58] sm:$0xff] }
  0xae   :  { %v207_v33 = vmul.f32 %v191_v27, %v89_v24  ;;  %v209_v39 = vmul.f32 %v193_v32, %v91_v35  ;;  %v98_v27 = vld [vmem:[#allocation6 + $0x50] sm:$0xff]  ;;  %v82_v32 = vld [vmem:[%s718_s1 + $0x50] sm:$0xff] }
  0xaf   :  { %v132_v43 = vpop.permute.xlu1 %131  ;;  %v127_v44 = vpop.permute.xlu0 %126 }
  0xb0   :  { %v223_v37 = vadd.f32 %v207_v33, %v73_v30  ;;  %v225_v46 = vadd.f32 %v209_v39, %v75_v42  ;;  %v195_v47 = vmul.f32 %v629_v19, %v132_v43  ;;  %v194_v48 = vmul.f32 %v629_v19, %v127_v44  ;;  %v101_v39 = vld [vmem:[#allocation6 + $0x68] sm:$0xff]  ;;  %v85_v44 = vld [vmem:[%s718_s1 + $0x68] sm:$0xff] }
  0xb2   :  { %v396_v40 = vpack.c.bf16 %v223_v37, %v222_v36  ;;  %v211_v51 = vmul.f32 %v195_v47, %v93_v49  ;;  %v210_v52 = vmul.f32 %v194_v48, %v92_v50  ;;  %v399_v53 = vpack.c.bf16 %v225_v46, %v224_v45  ;;  %v84_v45 = vld [vmem:[%s718_s1 + $0x60] sm:$0xff] }
  0xb3   :  { %v142_v56 = vpop.permute.xlu1 %141  ;;  %v137_v57 = vpop.permute.xlu0 %136 }
  0xb4   :  { %397 = vmatpush3.bf16.xpose.msra.mxu0 %v396_v40  ;;  %v227_v58 = vadd.f32 %v211_v51, %v77_v54  ;;  %v226_v59 = vadd.f32 %v210_v52, %v76_v55  ;;  %v197_v60 = vmul.f32 %v629_v19, %v142_v56  ;;  %v196_v61 = vmul.f32 %v629_v19, %v137_v57  ;;  %v100_v40 = vld [vmem:[#allocation6 + $0x60] sm:$0xff]  ;;  %v103_v52 = vld [vmem:[#allocation6 + $0x78] sm:$0xff]  ;;  %v87_v57 = vld [vmem:[%s718_s1 + $0x78] sm:$0xff] }
  0xb5   :  { %398 = vmatprep.subr.bf16.mxu0 %v507_v9 }
  0xb6   :  { %v213_v0 = vmul.f32 %v197_v60, %v95_v62  ;;  %v212_v1 = vmul.f32 %v196_v61, %v94_v63  ;;  %v402_v2 = vpack.c.bf16 %v227_v58, %v226_v59  ;;  %v86_v58 = vld [vmem:[%s718_s1 + $0x70] sm:$0xff]  ;;  %v342_v62 = vld [vmem:[%s722_s5] ss:$0 sm:$0xff]  ;;  %s474_s1 = scalar_lea.vmem %s332_s10, 128 }
  0xb7   :  { %v152_v5 = vpop.permute.xlu1 %151  ;;  %v147_v6 = vpop.permute.xlu0 %146  ;;  %p475_p2 = scmp.ne.s32.totalorder %s332_s10, %s474_s1  ;;  %p480_p4 = scmp.lt.s32.totalorder %s474_s1, %s474_s1 }
  0xb8   :  { %v229_v7 = vadd.f32 %v213_v0, %v79_v3  ;;  %v228_v8 = vadd.f32 %v212_v1, %v78_v4  ;;  %v199_v10 = vmul.f32 %v629_v19, %v152_v5  ;;  %v198_v11 = vmul.f32 %v629_v19, %v147_v6 }
  0xb9   :  { %p481_p5 = por %p480_p4, %p479_p3 }
  0xba   :  { %v215_v14 = vmul.f32 %v199_v10, %v97_v12  ;;  %v214_v15 = vmul.f32 %v198_v11, %v96_v13  ;;  %v405_v16 = vpack.c.bf16 %v229_v7, %v228_v8 }
  0xbb   :  { %v162_v20 = vpop.permute.xlu1 %161  ;;  %v157_v21 = vpop.permute.xlu0 %156  ;;  %p482_p6 = pnand %p481_p5, %p475_p2 }
  0xbc   :  { %400 = vmatpush3.bf16.xpose.msra.mxu0 %v399_v53  ;;  %v231_v22 = vadd.f32 %v215_v14, %v81_v17  ;;  %v230_v23 = vadd.f32 %v214_v15, %v80_v18  ;;  %v201_v24 = vmul.f32 %v629_v19, %v162_v20  ;;  %v200_v25 = vmul.f32 %v629_v19, %v157_v21  ;;  %v102_v53 = vld [vmem:[#allocation6 + $0x70] sm:$0xff] }
  0xbd   :  { %401 = vmatprep.subr.bf16.mxu0 %v507_v9 }
  0xbe   :  { %v217_v28 = vmul.f32 %v201_v24, %v99_v26  ;;  %v216_v29 = vmul.f32 %v200_v25, %v98_v27  ;;  %v408_v30 = vpack.c.bf16 %v231_v22, %v230_v23 }
  0xbf   :  { %v172_v33 = vpop.permute.xlu1 %171  ;;  %v167_v34 = vpop.permute.xlu0 %166 }
  0xc0   :  { %v233_v35 = vadd.f32 %v217_v28, %v83_v31  ;;  %v232_v36 = vadd.f32 %v216_v29, %v82_v32  ;;  %v203_v37 = vmul.f32 %v629_v19, %v172_v33  ;;  %v202_v38 = vmul.f32 %v629_v19, %v167_v34 }
  0xc2   :  { %v219_v41 = vmul.f32 %v203_v37, %v101_v39  ;;  %v218_v42 = vmul.f32 %v202_v38, %v100_v40  ;;  %v411_v43 = vpack.c.bf16 %v233_v35, %v232_v36 }
  0xc3   :  { %v182_v46 = vpop.permute.xlu1 %181  ;;  %v177_v47 = vpop.permute.xlu0 %176 }
  0xc4   :  { %403 = vmatpush3.bf16.xpose.msra.mxu0 %v402_v2  ;;  %v235_v48 = vadd.f32 %v219_v41, %v85_v44  ;;  %v234_v49 = vadd.f32 %v218_v42, %v84_v45  ;;  %v205_v50 = vmul.f32 %v629_v19, %v182_v46  ;;  %v204_v51 = vmul.f32 %v629_v19, %v177_v47  ;;  %v239_v19 = vld [vmem:[#allocation3] sm:$0xff] }
  0xc5   :  { %404 = vmatprep.subr.bf16.mxu0 %v507_v9 }
  0xc6   :  { %v221_v54 = vmul.f32 %v205_v50, %v103_v52  ;;  %v220_v55 = vmul.f32 %v204_v51, %v102_v53  ;;  %v414_v56 = vpack.c.bf16 %v235_v48, %v234_v49 }
  0xc8   :  { %v237_v59 = vadd.f32 %v221_v54, %v87_v57  ;;  %v236_v60 = vadd.f32 %v220_v55, %v86_v58 }
  0xca   :  { %v417_v61 = vpack.c.bf16 %v237_v59, %v236_v60 }
  0xcc   :  { %406 = vmatpush3.bf16.xpose.msra.mxu0 %v405_v16 }
  0xcd   :  { %407 = vmatprep.subr.bf16.mxu0 %v507_v9 }
  0xd4   :  { %409 = vmatpush3.bf16.xpose.msra.mxu0 %v408_v30 }
  0xd5   :  { %410 = vmatprep.subr.bf16.mxu0 %v507_v9 }
  0xdc   :  { %412 = vmatpush3.bf16.xpose.msra.mxu0 %v411_v43 }
  0xdd   :  { %413 = vmatprep.subr.bf16.mxu0 %v507_v9 }
  0xe4   :  { %415 = vmatpush3.bf16.xpose.msra.mxu0 %v414_v56 }
  0xe5   :  { %416 = vmatprep.subr.bf16.mxu0 %v507_v9 }
  0xec   :  { %418 = vmatpush3.bf16.xpose.msra.mxu0 %v417_v61 }
  0xf3   :  { %393 = vmatmul.mubr.f32.vlgmr.msra.gmra.mrb[0].mxu0 %v239_v19 }
 0x1c6   :  { %v306_v63 = vpop.f32.mrb[0].mxu0 }
 0x1c7   :  { %v323_v0 = vadd.f32 %v342_v62, %v306_v63  ;;  %v394_v1 = vpop.f32.mrb[1].mxu0 }
 0x1c9   :  { %324 = vst [vmem:[#allocation8] sm:$0xff] %v323_v0 }
 0x1ca   :  { %485 = shalt.err (!%p482_p6)
}
 0x1cb   :  { %s486_s13 = scalar_lea.hbm %s723_s6, 128 }
 0x1cc   :  { %p487_p7 = scmp.ne.s32.totalorder %s723_s6, %s486_s13  ;;  %p490_p8 = scmp.lt.u32.totalorder %s486_s13, %s723_s6 }
 0x1ce   :  { %p492_p9 = pnand %p490_p8, %p487_p7 }
 0x1d0   :  { %495 = shalt.err (!%p492_p9)
}
 0x1d1   :  { %334 = dma.vmem_to_hbm [thread:$0]  %s332_s10, 128, %s723_s6, [#allocation5]  }
 0x1d2   :  { %500 = dma.done.wait [#allocation5], 128  }
 0x1d3   :  { %501 = vsyncadd [#allocation5], 4294967168 }
 0x1d4   :  { %338 = vsyncpa [#allocation4], 1 }
 0x1d5   :  { %339 = vsyncpa [#allocation7], 1 }
 0x1d6   :  { %340 = vsyncpa [#allocation5], 1 }

</bundles_post_ra>
